<compile_context>
chip_gen: v6e
topology: v6e:2x2x1
jax: 0.10.0
libtpu: 0.0.40
codegen_flags: <defaults>
</compile_context>

<pallas_src>
import jax
import jax.numpy as jnp
from jax.experimental import pallas as pl
from jax.experimental.pallas import tpu as pltpu


LANE = 128      # TPU lane width
SUBLANE = 8


def _round_up(x, m):
    return (x + m - 1) // m * m


def hybrid_embed_kernel(xp_ref, w1_ref, b1_ref, w2_ref, b2_ref, o_ref):
    # xp_ref: (TM, K1)  patchified input tokens (compute dtype, e.g. bf16)
    # w1_ref: (K1, Fp)  backbone conv weight (flattened, transposed, F zero-padded)
    # b1_ref: (1,  Fp)  backbone conv bias (f32, zero-padded)
    # w2_ref: (Fp, E)   1x1 projection conv weight (transposed, padded F rows are 0)
    # b2_ref: (1,  E)   projection bias (f32)
    # o_ref : (TM, E)   output tokens
    h = jnp.dot(xp_ref[...], w1_ref[...], preferred_element_type=jnp.float32)
    h = jnp.maximum(h + b1_ref[...], 0.0)                       # bias + ReLU in f32
    y = jnp.dot(h.astype(w2_ref.dtype), w2_ref[...],
                preferred_element_type=jnp.float32)
    o_ref[...] = (y + b2_ref[...]).astype(o_ref.dtype)


def prepare_hybrid_embed_params(w_backbone, b_backbone, w_proj, b_proj,
                                *, compute_dtype=jnp.bfloat16):
    """Conv weights -> zero-padded matmul form.  Hoist to module init in
    production (or let it constant-fold under jit)."""
    F, C = w_backbone.shape[0], w_backbone.shape[1]
    E = w_proj.shape[0]
    K1 = C * 2 * 2
    Fp = _round_up(F, LANE)
    # Zero padding is correctness-neutral: padded F columns stay 0 through
    # bias+ReLU and the padded F rows of w2 contribute 0 to the second dot.
    w1 = jnp.zeros((K1, Fp), compute_dtype).at[:, :F].set(
        w_backbone.reshape(F, K1).T.astype(compute_dtype))
    b1 = jnp.zeros((1, Fp), jnp.float32).at[:, :F].set(
        b_backbone.astype(jnp.float32)[None, :])
    w2 = jnp.zeros((Fp, E), compute_dtype).at[:F, :].set(
        w_proj.reshape(E, F).T.astype(compute_dtype))
    b2 = b_proj.astype(jnp.float32)[None, :]
    return w1, b1, w2, b2


def _vmem_budget_bytes():
    cap = 64 * 1024 * 1024                      # conservative fallback
    try:
        cap = int(getattr(pltpu.get_tpu_info(), "vmem_capacity_bytes", cap)) or cap
    except Exception:
        pass
    # Leave headroom for compiler internal scratch / DMA bookkeeping:
    # v5e/v6e: 128 MiB -> ~112 MiB usable; v7x: 64 MiB -> ~48 MiB usable.
    return max(32 * 1024 * 1024, cap - 16 * 1024 * 1024)


def _pick_tiling(M, est_fn, vmem_budget, tm_cap):
    """Pick (tm, Mp): largest tm fitting the VMEM budget, preferring an exact
    divisor of M (no pad / no slice) and an even number of grid steps."""
    tm_max = max(SUBLANE, (min(tm_cap, _round_up(M, SUBLANE)) // SUBLANE) * SUBLANE)
    while tm_max > SUBLANE and est_fn(tm_max) > vmem_budget:
        tm_max -= SUBLANE
    if M % SUBLANE == 0:
        best_div = None
        for cand in range(min(tm_max, M), 0, -SUBLANE):
            if M % cand == 0:
                if (M // cand) % 2 == 0:
                    return cand, M              # even step count: both v7x TCs busy
                if best_div is None:
                    best_div = cand
        return best_div, M                      # always hits (8 divides M)
    # Fallback: pad M (adds one pad copy + one slice; avoided on the common path).
    tm = min(tm_max, _round_up(M, SUBLANE))
    return tm, _round_up(M, tm)


def hybrid_embed(x, w_backbone, b_backbone, w_proj, b_proj,
                 *, compute_dtype=jnp.bfloat16, out_dtype=None, tm_cap=1024):
    """x: (B, C, H, W) NCHW.
    w_backbone: (F, C, 2, 2), b_backbone: (F,)  -- Conv2d(in_chans, F, k=2, s=2) + ReLU
    w_proj:     (E, F, 1, 1), b_proj:     (E,)  -- Conv2d(F, E, 1)
    returns: (B, H//2 * W//2, E), dtype = out_dtype (default: compute_dtype).
    """
    B, C, H, W = x.shape
    F = w_backbone.shape[0]
    E = w_proj.shape[0]
    Hf, Wf = H // 2, W // 2
    N = Hf * Wf
    K1 = C * 2 * 2
    M = B * N
    Fp = _round_up(F, LANE)
    out_dtype = compute_dtype if out_dtype is None else out_dtype

    # Weight prep (hoist to init / constant-fold under jit in production).
    w1, b1, w2, b2 = prepare_hybrid_embed_params(
        w_backbone, b_backbone, w_proj, b_proj, compute_dtype=compute_dtype)

    bpe_in = jnp.dtype(compute_dtype).itemsize
    bpe_out = jnp.dtype(out_dtype).itemsize

    def est(tm):  # per-kernel VMEM footprint estimate
        return (2 * tm * K1 * bpe_in                # xp tile, double-buffered
                + 2 * tm * E * bpe_out              # out tile, double-buffered
                + 2 * (K1 * Fp + Fp * E) * bpe_in   # weights (default 2 buffers)
                + 2 * (Fp + E) * 4                  # biases
                + tm * Fp * 4                       # f32 h intermediate
                + tm * E * 4)                       # f32 y intermediate

    vmem_budget = _vmem_budget_bytes()
    tm, Mp = _pick_tiling(M, est, vmem_budget, tm_cap)

    # --- glue: patchify NCHW into (M, C*2*2) tokens, row-major over (b, h, w)
    # (exactly the order .flatten(2).transpose(1, 2) produces downstream).
    # Cast FIRST so the un-hidden transpose moves compute-dtype bytes, not f32.
    # TODO(synk): keep activations NHWC upstream so this transpose becomes a
    # cheap strided reshape and drops out of the hot path.
    xp = x.astype(compute_dtype).reshape(B, C, Hf, 2, Wf, 2)
    xp = jnp.transpose(xp, (0, 2, 4, 1, 3, 5)).reshape(M, K1)
    if Mp != M:
        xp = jnp.pad(xp, ((0, Mp - M), (0, 0)))

    cost = pl.CostEstimate(
        flops=2 * Mp * (K1 * Fp + Fp * E),
        transcendentals=0,
        bytes_accessed=(Mp * K1 * bpe_in + Mp * E * bpe_out
                        + (K1 * Fp + Fp * E) * bpe_in + (Fp + E) * 4))

    out = pl.pallas_call(
        hybrid_embed_kernel,
        out_shape=jax.ShapeDtypeStruct((Mp, E), out_dtype),
        grid_spec=pltpu.PrefetchScalarGridSpec(
            num_scalar_prefetch=0,
            grid=(Mp // tm,),
            in_specs=[
                pl.BlockSpec((tm, K1), lambda i: (i, 0)),
                pl.BlockSpec((K1, Fp), lambda i: (0, 0)),
                pl.BlockSpec((1, Fp), lambda i: (0, 0)),
                pl.BlockSpec((Fp, E), lambda i: (0, 0)),
                pl.BlockSpec((1, E), lambda i: (0, 0)),
            ],
            out_specs=pl.BlockSpec((tm, E), lambda i: (i, 0)),
        ),
        compiler_params=pltpu.CompilerParams(
            dimension_semantics=("parallel",),
            vmem_limit_bytes=int(vmem_budget)),
        cost_estimate=cost,
    )(xp, w1, b1, w2, b2)

    if Mp != M:
        out = out[:M]
    return out.reshape(B, N, E)


def hybrid_embed_ref(x, w_backbone, b_backbone, w_proj, b_proj):
    """Pure-JAX reference mirroring the PyTorch forward exactly (f32)."""
    feat = jax.lax.conv_general_dilated(
        x, w_backbone, window_strides=(2, 2), padding="VALID",
        dimension_numbers=("NCHW", "OIHW", "NCHW"))
    feat = feat + b_backbone[None, :, None, None]
    feat = jnp.maximum(feat, 0.0)                       # backbone ReLU
    proj = jax.lax.conv_general_dilated(
        feat, w_proj, window_strides=(1, 1), padding="VALID",
        dimension_numbers=("NCHW", "OIHW", "NCHW"))
    proj = proj + b_proj[None, :, None, None]           # (B, E, Hf, Wf)
    B, E, Hf, Wf = proj.shape
    return jnp.transpose(proj.reshape(B, E, Hf * Wf), (0, 2, 1))


if __name__ == "__main__":
    # Small shapes: B=2, in_chans=4, img_size=16 -> feature map 8x8,
    # feature_dim=8, embed_dim=32, num_patches=64  (M = B*N = 128 tokens).
    B, C, H, W = 2, 4, 16, 16
    FEAT_DIM, EMBED_DIM = 8, 32

    key = jax.random.PRNGKey(0)
    k0, k1, k2, k3, k4 = jax.random.split(key, 5)
    x = jax.random.normal(k0, (B, C, H, W), dtype=jnp.float32)
    w_backbone = 0.1 * jax.random.normal(k1, (FEAT_DIM, C, 2, 2), dtype=jnp.float32)
    b_backbone = 0.1 * jax.random.normal(k2, (FEAT_DIM,), dtype=jnp.float32)
    w_proj = 0.1 * jax.random.normal(k3, (EMBED_DIM, FEAT_DIM, 1, 1), dtype=jnp.float32)
    b_proj = 0.1 * jax.random.normal(k4, (EMBED_DIM,), dtype=jnp.float32)

    ref = hybrid_embed_ref(x, w_backbone, b_backbone, w_proj, b_proj)

    # Full-precision path: tight check against the conv reference.
    out_f32 = hybrid_embed(x, w_backbone, b_backbone, w_proj, b_proj,
                           compute_dtype=jnp.float32)
    out_f32 = jax.block_until_ready(out_f32)
    assert out_f32.shape == (B, (H // 2) * (W // 2), EMBED_DIM), out_f32.shape
    assert out_f32.dtype == jnp.float32, out_f32.dtype
    assert jnp.allclose(out_f32, ref, atol=1e-5, rtol=1e-5), \
        float(jnp.abs(out_f32 - ref).max())

    # Default bf16 fast path: bf16 operands + bf16 output, f32 accumulation.
    out_bf16 = hybrid_embed(x, w_backbone, b_backbone, w_proj, b_proj)
    out_bf16 = jax.block_until_ready(out_bf16)
    assert out_bf16.shape == (B, (H // 2) * (W // 2), EMBED_DIM), out_bf16.shape
    assert out_bf16.dtype == jnp.bfloat16, out_bf16.dtype
    assert jnp.allclose(out_bf16.astype(jnp.float32), ref, atol=5e-2, rtol=5e-2), \
        float(jnp.abs(out_bf16.astype(jnp.float32) - ref).max())

    print("KERNEL_OK")
</pallas_src>

<mosaic_0001>
module attributes {stable_mosaic.version = 11 : i64} {
  func.func @hybrid_embed_kernel(%arg0: i32, %arg1: memref<64x16xf32, #tpu.memory_space<vmem>>, %arg2: memref<16x128xf32, #tpu.memory_space<vmem>>, %arg3: memref<1x128xf32, #tpu.memory_space<vmem>>, %arg4: memref<128x32xf32, #tpu.memory_space<vmem>>, %arg5: memref<1x32xf32, #tpu.memory_space<vmem>>, %arg6: memref<64x32xf32, #tpu.memory_space<vmem>>) attributes {dimension_semantics = [#tpu.dimension_semantics<parallel>], iteration_bounds = array<i64: 2>, scalar_prefetch = 0 : i64, scratch_operands = 0 : i64, tpu.core_type = #tpu.core_type<tc>, window_params = [{transform_indices = @transform_0, window_bounds = array<i64: 64, 16>}, {pipeline_mode = #tpu.pipeline_mode<synchronous>, transform_indices = @transform_1, window_bounds = array<i64: 16, 128>}, {pipeline_mode = #tpu.pipeline_mode<synchronous>, transform_indices = @transform_2, window_bounds = array<i64: 1, 128>}, {pipeline_mode = #tpu.pipeline_mode<synchronous>, transform_indices = @transform_3, window_bounds = array<i64: 128, 32>}, {pipeline_mode = #tpu.pipeline_mode<synchronous>, transform_indices = @transform_4, window_bounds = array<i64: 1, 32>}, {transform_indices = @transform_5, window_bounds = array<i64: 64, 32>}]} {
    %c0 = arith.constant 0 : index
    %c0_0 = arith.constant 0 : index
    %0 = vector.load %arg1[%c0, %c0_0] : memref<64x16xf32, #tpu.memory_space<vmem>>, vector<64x16xf32>
    %c0_1 = arith.constant 0 : index
    %c0_2 = arith.constant 0 : index
    %1 = vector.load %arg2[%c0_1, %c0_2] : memref<16x128xf32, #tpu.memory_space<vmem>>, vector<16x128xf32>
    %cst = arith.constant dense<0.000000e+00> : vector<64x128xf32>
    %2 = tpu.matmul %0, %1, %cst {dimension_numbers = #tpu.dot_dimension_numbers<[1], [0], [0], [1], [0, 0, 1, 1], [], []>} : vector<64x16xf32>, vector<16x128xf32>, vector<64x128xf32> -> vector<64x128xf32>
    %c0_3 = arith.constant 0 : index
    %c0_4 = arith.constant 0 : index
    %3 = vector.load %arg3[%c0_3, %c0_4] : memref<1x128xf32, #tpu.memory_space<vmem>>, vector<1x128xf32>
    %4 = vector.broadcast %3 : vector<1x128xf32> to vector<64x128xf32>
    %5 = arith.addf %2, %4 : vector<64x128xf32>
    %cst_5 = arith.constant 0.000000e+00 : f32
    %6 = vector.broadcast %cst_5 : f32 to vector<64x128xf32>
    %7 = arith.maximumf %5, %6 : vector<64x128xf32>
    %c0_6 = arith.constant 0 : index
    %c0_7 = arith.constant 0 : index
    %8 = vector.load %arg4[%c0_6, %c0_7] : memref<128x32xf32, #tpu.memory_space<vmem>>, vector<128x32xf32>
    %cst_8 = arith.constant dense<0.000000e+00> : vector<64x32xf32>
    %9 = tpu.matmul %7, %8, %cst_8 {dimension_numbers = #tpu.dot_dimension_numbers<[1], [0], [0], [1], [0, 0, 1, 1], [], []>} : vector<64x128xf32>, vector<128x32xf32>, vector<64x32xf32> -> vector<64x32xf32>
    %c0_9 = arith.constant 0 : index
    %c0_10 = arith.constant 0 : index
    %10 = vector.load %arg5[%c0_9, %c0_10] : memref<1x32xf32, #tpu.memory_space<vmem>>, vector<1x32xf32>
    %11 = vector.broadcast %10 : vector<1x32xf32> to vector<64x32xf32>
    %12 = arith.addf %9, %11 : vector<64x32xf32>
    %c0_11 = arith.constant 0 : index
    %c0_12 = arith.constant 0 : index
    %13 = vector.load %arg6[%c0_11, %c0_12] : memref<64x32xf32, #tpu.memory_space<vmem>>, vector<64x32xf32>
    tpu.vector_store %arg6[%c0_11, %c0_12], %12 {strides = array<i32>} : memref<64x32xf32, #tpu.memory_space<vmem>>, vector<64x32xf32>,
    return
  }
  func.func @transform_0(%arg0: i32) -> (i32, i32) {
    %c0_i32 = arith.constant 0 : i32
    %c0_i32_0 = arith.constant 0 : i32
    return %arg0, %c0_i32 : i32, i32
  }
  func.func @transform_1(%arg0: i32) -> (i32, i32) {
    %c0_i32 = arith.constant 0 : i32
    %c0_i32_0 = arith.constant 0 : i32
    %c0_i32_1 = arith.constant 0 : i32
    return %c0_i32, %c0_i32_0 : i32, i32
  }
  func.func @transform_2(%arg0: i32) -> (i32, i32) {
    %c0_i32 = arith.constant 0 : i32
    %c0_i32_0 = arith.constant 0 : i32
    %c0_i32_1 = arith.constant 0 : i32
    return %c0_i32, %c0_i32_0 : i32, i32
  }
  func.func @transform_3(%arg0: i32) -> (i32, i32) {
    %c0_i32 = arith.constant 0 : i32
    %c0_i32_0 = arith.constant 0 : i32
    %c0_i32_1 = arith.constant 0 : i32
    return %c0_i32, %c0_i32_0 : i32, i32
  }
  func.func @transform_4(%arg0: i32) -> (i32, i32) {
    %c0_i32 = arith.constant 0 : i32
    %c0_i32_0 = arith.constant 0 : i32
    %c0_i32_1 = arith.constant 0 : i32
    return %c0_i32, %c0_i32_0 : i32, i32
  }
  func.func @transform_5(%arg0: i32) -> (i32, i32) {
    %c0_i32 = arith.constant 0 : i32
    %c0_i32_0 = arith.constant 0 : i32
    return %arg0, %c0_i32 : i32, i32
  }
}

</mosaic_0001>

<bundles_post_ra>
// kernel: tpu_custom_call.1
= control target key start
LH: loop header
LB: loop body
LE: loop exit
PB: predicated region body
PF: predicated region fallthrough
CT: control target
= control target key end

     0   :  { %s769_s18 = smov 0   ;;  %s879_s0 = inlined_call_operand.vmem [shape: f32[128,16], index: 0, kind: input, shape index: {}]   ;;  %s880_s1 = inlined_call_operand.vmem [shape: f32[16,128], index: 1, kind: input, shape index: {}]   ;;  %s881_s2 = inlined_call_operand.vmem [shape: f32[1,128], index: 2, kind: input, shape index: {}]   ;;  %s882_s3 = inlined_call_operand.vmem [shape: f32[128,32], index: 3, kind: input, shape index: {}]   ;;  %s883_s4 = inlined_call_operand.vmem [shape: f32[1,32], index: 4, kind: input, shape index: {}]   ;;  %s884_s5 = inlined_call_operand.vmem [shape: f32[128,32], index: 5, kind: output, shape index: {}]  }
   0x1 LB: > { %s576_s19 = sadd.s32 4294967295, %s737_s18   ;;  %p580_p0 = scmp.ge.s32.totalorder %s737_s18, 1  ;;  %s737_s18 = sphi %s769_s18, %s15_s18  }
   0x2   : > { %p188_p1 = scmp.lt.s32.totalorder %s737_s18, 3 }
   0x4   : > { %p189_p2 = pnand %p580_p0, %p188_p1 }
   0x5   : > { %s581_s24 = sshll.u32 (!%p189_p2), %s576_s19, 3 }
   0x6   : > { %192 = sbr.rel (%p189_p2) target bundleno = 429 (0x1ad), region = 40  ;;  %p217_p3 = scmp.lt.s32.totalorder (!%p189_p2), %s581_s24, 15 }
   0xb   : > { %v237_v0 = vld [vmem:[%s880_s1 + $0x8] sm:$0xff]  ;;  %v236_v1 = vld [vmem:[%s880_s1] sm:$0xff]  ;;  %v398_v2 = vld [vmem:[%s882_s3 + $0x78] sm:$0xff]  ;;  %s886_s24 = smov (!%p217_p3, %s581_s24), 15  ;;  %vm245_vm0 = vcmask 130048   ;;  %vm511_vm1 = vcmask 261120  }
   0xc   : > { %631 = vmatprep.subr.mxu0 %v237_v0  ;;  %691 = vmatprep.subr.mxu1 %v398_v2  ;;  %v397_v3 = vld [vmem:[%s882_s3 + $0x70] sm:$0xff]  ;;  %v396_v4 = vld [vmem:[%s882_s3 + $0x68] sm:$0xff]  ;;  %s582_s6 = sshll.u32 %s886_s24, 3  ;;  %v395_v5 = vld [vmem:[%s882_s3 + $0x60] sm:$0xff] }
   0xd   : > { %632 = vmatpush3.msra.mxu0 %v237_v0  ;;  %707 = vmatpush3.msra.mxu1 %v398_v2  ;;  %s800_s9 = scalar_lea.vmem %s879_s0, %s582_s6  ;;  %v394_v9 = vld [vmem:[%s882_s3 + $0x58] sm:$0xff]  ;;  %v393_v12 = vld [vmem:[%s882_s3 + $0x50] sm:$0xff]  ;;  %v392_v15 = vld [vmem:[%s882_s3 + $0x48] sm:$0xff]  ;;  %s226_s21 = scalar_lea.vmem %s884_s5, %s582_s6 }
   0xe   : > { %633 = vmatprep.subr.mxu0 %v236_v1  ;;  %692 = vmatprep.subr.mxu1 %v397_v3  ;;  %v228_v6 = vld [vmem:[%s800_s9] sm:$0xff]  ;;  %v229_v7 = vld [vmem:[%s800_s9 + $0x8] sm:$0xff]  ;;  %v230_v8 = vld [vmem:[%s800_s9 + $0x10] sm:$0xff] }
   0xf   : > { %634 = vmatpush3.msra.mxu0 %v236_v1  ;;  %708 = vmatpush3.msra.mxu1 %v397_v3  ;;  %v231_v10 = vld [vmem:[%s800_s9 + $0x18] sm:$0xff]  ;;  %v232_v11 = vld [vmem:[%s800_s9 + $0x20] sm:$0xff]  ;;  %v233_v13 = vld [vmem:[%s800_s9 + $0x28] sm:$0xff] }
  0x10   : > { %647 = vmatprep.subr.mxu0 %v398_v2  ;;  %693 = vmatprep.subr.mxu1 %v396_v4  ;;  %v234_v14 = vld [vmem:[%s800_s9 + $0x30] sm:$0xff]  ;;  %v235_v16 = vld [vmem:[%s800_s9 + $0x38] sm:$0xff]  ;;  %v391_v17 = vld [vmem:[%s882_s3 + $0x40] sm:$0xff] }
  0x11   : > { %709 = vmatpush3.msra.mxu1 %v396_v4  ;;  %635 = vmatprep.mubr.msk.f32.mxu0 %vm245_vm0, %v228_v6  ;;  %v390_v18 = vld [vmem:[%s882_s3 + $0x38] sm:$0xff]  ;;  %v389_v19 = vld [vmem:[%s882_s3 + $0x30] sm:$0xff]  ;;  %v388_v20 = vld [vmem:[%s882_s3 + $0x28] sm:$0xff] }
  0x12   : > { %694 = vmatprep.subr.mxu1 %v395_v5  ;;  %636 = vmatmul.mubr.msk.f32.vlgmr.msra.gmra.mxu0 %vm245_vm0, %v229_v7  ;;  %v387_v21 = vld [vmem:[%s882_s3 + $0x20] sm:$0xff]  ;;  %v386_v22 = vld [vmem:[%s882_s3 + $0x18] sm:$0xff]  ;;  %v385_v23 = vld [vmem:[%s882_s3 + $0x10] sm:$0xff] }
  0x13   : > { %710 = vmatpush3.msra.mxu1 %v395_v5  ;;  %638 = vmatprep.mubr.msk.f32.mxu0 %vm245_vm0, %v230_v8  ;;  %v384_v24 = vld [vmem:[%s882_s3 + $0x8] sm:$0xff]  ;;  %v383_v25 = vld [vmem:[%s882_s3] sm:$0xff] }
  0x14   : > { %695 = vmatprep.subr.mxu1 %v394_v9  ;;  %648 = vmatpush3.msra.mxu0 %v398_v2  ;;  %v585_v26 = vld [vmem:[%s881_s2] ss:$0 sm:$0xff] }
  0x15   : > { %649 = vmatprep.subr.mxu0 %v397_v3  ;;  %711 = vmatpush3.msra.mxu1 %v394_v9  ;;  %v594_v51 = vld [vmem:[%s883_s4] ss:$0 sm:$0xff] }
  0x16   : > { %650 = vmatpush3.msra.mxu0 %v397_v3  ;;  %696 = vmatprep.subr.mxu1 %v393_v12 }
  0x17   : > { %639 = vmatmul.mubr.msk.f32.gmra.mxu0 %vm245_vm0, %v231_v10  ;;  %651 = vmatprep.subr.mxu0 %v396_v4 }
  0x18   : > { %641 = vmatprep.mubr.msk.f32.mxu0 %vm245_vm0, %v232_v11  ;;  %652 = vmatpush3.msra.mxu0 %v396_v4 }
  0x19   : > { %653 = vmatprep.subr.mxu0 %v395_v5  ;;  %712 = vmatpush3.msra.mxu1 %v393_v12 }
  0x1a   : > { %654 = vmatpush3.msra.mxu0 %v395_v5  ;;  %697 = vmatprep.subr.mxu1 %v392_v15 }
  0x1b   : > { %642 = vmatmul.mubr.msk.f32.gmra.mxu0 %vm245_vm0, %v233_v13  ;;  %655 = vmatprep.subr.mxu0 %v394_v9 }
  0x1c   : > { %644 = vmatprep.mubr.msk.f32.mxu0 %vm245_vm0, %v234_v14  ;;  %656 = vmatpush3.msra.mxu0 %v394_v9 }
  0x1d   : > { %657 = vmatprep.subr.mxu0 %v393_v12  ;;  %713 = vmatpush3.msra.mxu1 %v392_v15 }
  0x1e   : > { %658 = vmatpush3.msra.mxu0 %v393_v12  ;;  %698 = vmatprep.subr.mxu1 %v391_v17 }
  0x1f   : > { %645 = vmatmul.mubr.msk.f32.gmra.mxu0 %vm245_vm0, %v235_v16  ;;  %659 = vmatprep.subr.mxu0 %v392_v15 }
  0x20   : > { %660 = vmatpush3.msra.mxu0 %v392_v15  ;;  %714 = vmatpush3.msra.mxu1 %v391_v17 }
  0x21   : > { %661 = vmatprep.subr.mxu0 %v391_v17  ;;  %699 = vmatprep.subr.mxu1 %v390_v18 }
  0x22   : > { %662 = vmatpush3.msra.mxu0 %v391_v17  ;;  %715 = vmatpush3.msra.mxu1 %v390_v18 }
  0x23   : > { %663 = vmatprep.subr.mxu0 %v390_v18  ;;  %700 = vmatprep.subr.mxu1 %v389_v19 }
  0x24   : > { %664 = vmatpush3.msra.mxu0 %v390_v18  ;;  %716 = vmatpush3.msra.mxu1 %v389_v19 }
  0x25   : > { %665 = vmatprep.subr.mxu0 %v389_v19  ;;  %701 = vmatprep.subr.mxu1 %v388_v20 }
  0x26   : > { %666 = vmatpush3.msra.mxu0 %v389_v19  ;;  %717 = vmatpush3.msra.mxu1 %v388_v20 }
  0x27   : > { %667 = vmatprep.subr.mxu0 %v388_v20  ;;  %702 = vmatprep.subr.mxu1 %v387_v21 }
  0x28   : > { %668 = vmatpush3.msra.mxu0 %v388_v20  ;;  %718 = vmatpush3.msra.mxu1 %v387_v21 }
  0x29   : > { %669 = vmatprep.subr.mxu0 %v387_v21  ;;  %703 = vmatprep.subr.mxu1 %v386_v22 }
  0x2a   : > { %670 = vmatpush3.msra.mxu0 %v387_v21  ;;  %719 = vmatpush3.msra.mxu1 %v386_v22 }
  0x2b   : > { %671 = vmatprep.subr.mxu0 %v386_v22  ;;  %704 = vmatprep.subr.mxu1 %v385_v23 }
  0x2c   : > { %672 = vmatpush3.msra.mxu0 %v386_v22  ;;  %720 = vmatpush3.msra.mxu1 %v385_v23 }
  0x2d   : > { %673 = vmatprep.subr.mxu0 %v385_v23  ;;  %705 = vmatprep.subr.mxu1 %v384_v24 }
  0x2e   : > { %674 = vmatpush3.msra.mxu0 %v385_v23  ;;  %721 = vmatpush3.msra.mxu1 %v384_v24 }
  0x2f   : > { %675 = vmatprep.subr.mxu0 %v384_v24  ;;  %706 = vmatprep.subr.mxu1 %v383_v25 }
  0x30   : > { %676 = vmatpush3.msra.mxu0 %v384_v24  ;;  %722 = vmatpush3.msra.mxu1 %v383_v25 }
  0x31   : > { %677 = vmatprep.subr.mxu0 %v383_v25 }
  0x32   : > { %678 = vmatpush3.msra.mxu0 %v383_v25 }
  0xd2   : > { %v637_v27 = vpop.f32.mrf.mxu0 }
  0xd3   : > { %v342_v28 = vadd.f32 %v637_v27, %v585_v26 }
  0xd4   : > { %v336_v29 = vpop.f32.mrf.mxu0 }
  0xd5   : > { %v337_v30 = vadd.f32 %v585_v26, %v336_v29  ;;  %v376_v33 = vmax.f32 %v342_v28, 0.0 }
  0xd7   : > { %v640_v31 = vpop.f32.mrf.mxu0  ;;  %v375_v32 = vmax.f32 %v337_v30, 0.0 }
  0xd8   : > { %v352_v34 = vadd.f32 %v640_v31, %v585_v26 }
  0xd9   : > { %v346_v35 = vpop.f32.mrf.mxu0  ;;  %679 = vmatprep.mubr.f32.mxu0 %v375_v32 }
  0xda   : > { %v347_v36 = vadd.f32 %v585_v26, %v346_v35  ;;  %680 = vmatmul.mubr.f32.vlgmr.msra.gmra.mxu0 %v376_v33  ;;  %v378_v39 = vmax.f32 %v352_v34, 0.0 }
  0xdb   : > { %v643_v37 = vpop.f32.mrf.mxu0 }
  0xdc   : > { %v377_v38 = vmax.f32 %v347_v36, 0.0  ;;  %v362_v40 = vadd.f32 %v643_v37, %v585_v26 }
  0xdd   : > { %v356_v41 = vpop.f32.mrf.mxu0 }
  0xde   : > { %v357_v42 = vadd.f32 %v585_v26, %v356_v41  ;;  %682 = vmatprep.mubr.f32.mxu1 %v377_v38  ;;  %v380_v45 = vmax.f32 %v362_v40, 0.0 }
  0xdf   : > { %v646_v43 = vpop.f32.mrf.mxu0  ;;  %683 = vmatmul.mubr.f32.vlgmr.msra.gmra.mxu1 %v378_v39 }
  0xe0   : > { %v379_v44 = vmax.f32 %v357_v42, 0.0  ;;  %v372_v46 = vadd.f32 %v646_v43, %v585_v26 }
  0xe1   : > { %v366_v47 = vpop.f32.mrf.mxu0 }
  0xe2   : > { %v367_v48 = vadd.f32 %v585_v26, %v366_v47  ;;  %685 = vmatprep.mubr.f32.mxu1 %v379_v44  ;;  %v382_v50 = vmax.f32 %v372_v46, 0.0 }
  0xe3   : > { %686 = vmatmul.mubr.f32.gmra.mxu1 %v380_v45 }
  0xe4   : > { %v381_v49 = vmax.f32 %v367_v48, 0.0 }
  0xe6   : > { %688 = vmatprep.mubr.f32.mxu1 %v381_v49 }
  0xe7   : > { %689 = vmatmul.mubr.f32.gmra.mxu1 %v382_v50 }
 0x19a   : > { %v681_v52 = vpop.f32.mrf.mxu0 }
 0x19b   : > { %v478_v53 = vadd.f32 %v681_v52, %v594_v51 }
 0x19c   : > { %v472_v54 = vpop.f32.mrf.mxu0 }
 0x19d   : > { %513 = vst.msk [vmem:[%s226_s21 + $0x8] sm:$0xff] %vm511_vm1, %v478_v53  ;;  %v473_v55 = vadd.f32 %v594_v51, %v472_v54 }
 0x19f   : > { %v684_v56 = vpop.f32.mrf.mxu1  ;;  %512 = vst.msk [vmem:[%s226_s21] sm:$0xff] %vm511_vm1, %v473_v55 }
 0x1a0   : > { %v488_v57 = vadd.f32 %v684_v56, %v594_v51 }
 0x1a1   : > { %v482_v58 = vpop.f32.mrf.mxu1 }
 0x1a2   : > { %515 = vst.msk [vmem:[%s226_s21 + $0x18] sm:$0xff] %vm511_vm1, %v488_v57  ;;  %v483_v59 = vadd.f32 %v594_v51, %v482_v58 }
 0x1a3   : > { %v687_v60 = vpop.f32.mrf.mxu1 }
 0x1a4   : > { %514 = vst.msk [vmem:[%s226_s21 + $0x10] sm:$0xff] %vm511_vm1, %v483_v59  ;;  %v498_v61 = vadd.f32 %v687_v60, %v594_v51 }
 0x1a5   : > { %v492_v62 = vpop.f32.mrf.mxu1 }
 0x1a6   : > { %517 = vst.msk [vmem:[%s226_s21 + $0x28] sm:$0xff] %vm511_vm1, %v498_v61  ;;  %v493_v63 = vadd.f32 %v594_v51, %v492_v62 }
 0x1a7   : > { %v690_v0 = vpop.f32.mrf.mxu1 }
 0x1a8   : > { %516 = vst.msk [vmem:[%s226_s21 + $0x20] sm:$0xff] %vm511_vm1, %v493_v63  ;;  %v508_v1 = vadd.f32 %v690_v0, %v594_v51 }
 0x1a9   : > { %v502_v2 = vpop.f32.mrf.mxu1 }
 0x1aa   : > { %519 = vst.msk [vmem:[%s226_s21 + $0x38] sm:$0xff] %vm511_vm1, %v508_v1  ;;  %v503_v3 = vadd.f32 %v594_v51, %v502_v2 }
 0x1ac   : > { %518 = vst.msk [vmem:[%s226_s21 + $0x30] sm:$0xff] %vm511_vm1, %v503_v3 }
 0x1ad PF: > { %s15_s18 = sadd.s32 1, %s737_s18  }
 0x1ae   : > { %p12_p4 = scmp.ge.s32.totalorder %s15_s18, 4  }
 0x1b0   :  { %14 = sbr.rel (!%p12_p4) target bundleno = 1 (0x1), region = 70 }

</bundles_post_ra>
